<compile_context>
chip_gen: v7x
topology: tpu7x:2x2x1
jax: 0.10.0
libtpu: 0.0.40
codegen_flags: <defaults>
</compile_context>

<pallas_src>
import functools

import jax
import jax.numpy as jnp
from jax.experimental import pallas as pl
from jax.experimental.pallas import tpu as pltpu


_NEG_LARGE = -1e30  # finite "minus infinity" used to mask the class tail


def _cross_entropy_kernel(num_classes, mask_tail,
                          logits_ref, target_ref, loss_ref,
                          m_scr, l_scr, t_scr):
    """Process one (TN, TC) logits tile of a streaming cross-entropy.

    Grid = (num_row_blocks, num_class_blocks).  Running max (m), running
    exp-sum (l) and running target-logit (t) live in VMEM scratch.
    """
    j = pl.program_id(1)

    @pl.when(j == 0)
    def _init():
        m_scr[...] = jnp.full_like(m_scr, -jnp.inf)
        l_scr[...] = jnp.zeros_like(l_scr)
        t_scr[...] = jnp.zeros_like(t_scr)

    tn, tc = logits_ref.shape
    # Stream in the input dtype; accumulate in f32.
    x = logits_ref[...].astype(jnp.float32)                       # (TN, TC)
    col_ids = jax.lax.broadcasted_iota(jnp.int32, (tn, tc), 1)    # local 0..tc-1

    if mask_tail:  # static: only emitted when C is not a multiple of tc
        # Columns whose global index >= C carry undefined boundary data;
        # force them to a large negative so they cannot affect max / exp-sum.
        x = jnp.where(col_ids < (num_classes - j * tc), x, _NEG_LARGE)

    # --- online log-sum-exp update --------------------------------------
    m_prev = m_scr[...]
    blk_max = jnp.max(x, axis=-1, keepdims=True)                  # (TN, 1)
    m_new = jnp.maximum(m_prev, blk_max)
    alpha = jnp.exp(m_prev - m_new)                               # 0.0 on first block
    l_scr[...] = alpha * l_scr[...] + jnp.sum(
        jnp.exp(x - m_new), axis=-1, keepdims=True)
    m_scr[...] = m_new

    # --- fused target-logit gather (select, no one-hot multiply) --------
    # Offset the (TN,1) target column by the block start, not the full iota.
    tgt_local = target_ref[...] - j * tc                          # (TN, 1) int32
    t_scr[...] = t_scr[...] + jnp.sum(
        jnp.where(col_ids == tgt_local, x, 0.0), axis=-1, keepdims=True)

    # --- finalize: per-row loss = logsumexp - target_logit ---------------
    @pl.when(j == pl.num_programs(1) - 1)
    def _finalize():
        loss_ref[...] = (
            m_scr[...] + jnp.log(l_scr[...]) - t_scr[...]
        ).astype(loss_ref.dtype)


def _round_up(a, b):
    return (a + b - 1) // b * b


@functools.partial(jax.jit, static_argnames=("block_n", "block_c"))
def cross_entropy_loss(logits, targets, *, block_n=256, block_c=4096):
    """logits: (N, C) float array, targets: (N,) integer class indices."""
    n, c = logits.shape

    # dtype-dependent sublane multiple: f32 -> 8, bf16 -> 16, 8-bit -> 32.
    itemsize = jnp.dtype(logits.dtype).itemsize
    sub = {4: 8, 2: 16, 1: 32}.get(itemsize, 8)

    # --- row tile ---------------------------------------------------------
    if n <= sub:
        tn = n                              # block == full dim (always legal)
    else:
        tn = _round_up(min(block_n, _round_up(n, sub)), sub)
        # Keep >= 2 row blocks when possible so the 'parallel' axis can shard
        # across v7x's two TensorCores.
        if pl.cdiv(n, tn) < 2:
            tn = max(sub, _round_up(pl.cdiv(n, 2), sub))

    # --- class tile (reduction / streaming axis, last in grid) -------------
    if c <= 128:
        tc = c                              # block == full dim (always legal)
    else:
        tc = min(block_c, _round_up(c, 128))

    grid = (pl.cdiv(n, tn), pl.cdiv(c, tc))
    mask_tail = (c % tc) != 0               # static flag for the kernel

    targets_col = targets.astype(jnp.int32).reshape(n, 1)

    kernel = functools.partial(_cross_entropy_kernel, c, mask_tail)

    per_row = pl.pallas_call(
        kernel,
        out_shape=jax.ShapeDtypeStruct((n, 1), jnp.float32),
        grid_spec=pltpu.PrefetchScalarGridSpec(
            num_scalar_prefetch=0,
            grid=grid,
            in_specs=[
                pl.BlockSpec((tn, tc), lambda i, j: (i, j)),   # logits tile
                pl.BlockSpec((tn, 1), lambda i, j: (i, 0)),    # targets column
            ],
            out_specs=pl.BlockSpec((tn, 1), lambda i, j: (i, 0)),
            scratch_shapes=[
                pltpu.VMEM((tn, 1), jnp.float32),  # running max
                pltpu.VMEM((tn, 1), jnp.float32),  # running exp-sum
                pltpu.VMEM((tn, 1), jnp.float32),  # running target logit
            ],
        ),
        compiler_params=pltpu.CompilerParams(
            dimension_semantics=("parallel", "arbitrary"),
            vmem_limit_bytes=48 * 1024 * 1024,
        ),
    )(logits, targets_col)

    # Tiny final reduction in plain JAX: mean over the true N rows.
    return jnp.sum(per_row[:, 0]) / jnp.float32(n)


def _ref_loss(logits, targets):
    logits = logits.astype(jnp.float32)
    lse = jax.scipy.special.logsumexp(logits, axis=-1)
    return jnp.mean(lse - logits[jnp.arange(logits.shape[0]), targets])


if __name__ == "__main__":
    key = jax.random.PRNGKey(0)
    k1, k2, k3, k4, k5, k6 = jax.random.split(key, 6)

    # Case 1: small shapes consistent with the module (batch=8, classes=32).
    n1, c1 = 8, 32
    logits1 = jax.random.normal(k1, (n1, c1), dtype=jnp.float32)
    targets1 = jax.random.randint(k2, (n1,), 0, c1, dtype=jnp.int32)
    loss1 = cross_entropy_loss(logits1, targets1)
    jax.block_until_ready(loss1)
    ref1 = _ref_loss(logits1, targets1)
    assert jnp.allclose(loss1, ref1, atol=1e-5, rtol=1e-5), (loss1, ref1)

    # Case 2: multi-block grid with NON-dividing shapes (row tail 60 % 32,
    # class tail 300 % 128) -- exercises the un-padded boundary blocks, the
    # in-kernel class-tail mask and the online logsumexp accumulator path.
    n2, c2 = 60, 300
    logits2 = jax.random.normal(k3, (n2, c2), dtype=jnp.float32)
    targets2 = jax.random.randint(k4, (n2,), 0, c2, dtype=jnp.int32)
    loss2 = cross_entropy_loss(logits2, targets2, block_n=32, block_c=128)
    jax.block_until_ready(loss2)
    ref2 = _ref_loss(logits2, targets2)
    assert jnp.allclose(loss2, ref2, atol=1e-5, rtol=1e-5), (loss2, ref2)

    # Case 3: bf16 logits streamed directly (no wrapper upcast); f32 accum.
    n3, c3 = 32, 384
    logits3 = jax.random.normal(k5, (n3, c3), dtype=jnp.float32).astype(jnp.bfloat16)
    targets3 = jax.random.randint(k6, (n3,), 0, c3, dtype=jnp.int32)
    loss3 = cross_entropy_loss(logits3, targets3)
    jax.block_until_ready(loss3)
    ref3 = _ref_loss(logits3, targets3)
    assert jnp.allclose(loss3, ref3, atol=2e-3, rtol=2e-3), (loss3, ref3)

    print("KERNEL_OK")
</pallas_src>

<mosaic_0001>
module attributes {stable_mosaic.version = 11 : i64} {
  func.func @_cross_entropy_kernel(%arg0: i32, %arg1: i32, %arg2: memref<8x32xf32, #tpu.memory_space<vmem>>, %arg3: memref<8x1xi32, #tpu.memory_space<vmem>>, %arg4: memref<8x1xf32, #tpu.memory_space<vmem>>, %arg5: memref<8x1xf32, #tpu.memory_space<vmem>>, %arg6: memref<8x1xf32, #tpu.memory_space<vmem>>, %arg7: memref<8x1xf32, #tpu.memory_space<vmem>>) attributes {dimension_semantics = [#tpu.dimension_semantics<parallel>, #tpu.dimension_semantics<arbitrary>], iteration_bounds = array<i64: 1, 1>, scalar_prefetch = 0 : i64, scratch_operands = 3 : i64, tpu.core_type = #tpu.core_type<tc>, window_params = [{transform_indices = @transform_0, window_bounds = array<i64: 8, 32>}, {transform_indices = @transform_1, window_bounds = array<i64: 8, 1>}, {transform_indices = @transform_2, window_bounds = array<i64: 8, 1>}]} {
    %c0_i32 = arith.constant 0 : i32
    %0 = arith.cmpi eq, %arg1, %c0_i32 : i32
    %1 = arith.extui %0 : i1 to i32
    %c0_i32_0 = arith.constant 0 : i32
    %2 = arith.cmpi ne, %1, %c0_i32_0 : i32
    scf.if %2 {
      %cst_21 = arith.constant 0xFF800000 : f32
      %37 = vector.broadcast %cst_21 : f32 to vector<8x1xf32>
      %c0_22 = arith.constant 0 : index
      %c0_23 = arith.constant 0 : index
      %38 = vector.load %arg5[%c0_22, %c0_23] : memref<8x1xf32, #tpu.memory_space<vmem>>, vector<8x1xf32>
      tpu.vector_store %arg5[%c0_22, %c0_23], %37 {strides = array<i32>} : memref<8x1xf32, #tpu.memory_space<vmem>>, vector<8x1xf32>,
      %cst_24 = arith.constant 0.000000e+00 : f32
      %39 = vector.broadcast %cst_24 : f32 to vector<8x1xf32>
      %c0_25 = arith.constant 0 : index
      %c0_26 = arith.constant 0 : index
      %40 = vector.load %arg6[%c0_25, %c0_26] : memref<8x1xf32, #tpu.memory_space<vmem>>, vector<8x1xf32>
      tpu.vector_store %arg6[%c0_25, %c0_26], %39 {strides = array<i32>} : memref<8x1xf32, #tpu.memory_space<vmem>>, vector<8x1xf32>,
      %cst_27 = arith.constant 0.000000e+00 : f32
      %41 = vector.broadcast %cst_27 : f32 to vector<8x1xf32>
      %c0_28 = arith.constant 0 : index
      %c0_29 = arith.constant 0 : index
      %42 = vector.load %arg7[%c0_28, %c0_29] : memref<8x1xf32, #tpu.memory_space<vmem>>, vector<8x1xf32>
      tpu.vector_store %arg7[%c0_28, %c0_29], %41 {strides = array<i32>} : memref<8x1xf32, #tpu.memory_space<vmem>>, vector<8x1xf32>,
    } else {
    }
    %c0 = arith.constant 0 : index
    %c0_1 = arith.constant 0 : index
    %3 = vector.load %arg2[%c0, %c0_1] : memref<8x32xf32, #tpu.memory_space<vmem>>, vector<8x32xf32>
    %4 = tpu.iota {dimensions = array<i32: 1>} : vector<8x32xi32>
    %c0_2 = arith.constant 0 : index
    %c0_3 = arith.constant 0 : index
    %5 = vector.load %arg5[%c0_2, %c0_3] : memref<8x1xf32, #tpu.memory_space<vmem>>, vector<8x1xf32>
    %cst = arith.constant dense<0xFF800000> : vector<8xf32>
    %6 = vector.multi_reduction <maximumf>, %3, %cst [1] : vector<8x32xf32> to vector<8xf32>
    %7 = vector.shape_cast %6 : vector<8xf32> to vector<8x1xf32>
    %8 = arith.maximumf %5, %7 : vector<8x1xf32>
    %9 = arith.subf %5, %8 : vector<8x1xf32>
    %10 = math.exp %9 : vector<8x1xf32>
    %c0_4 = arith.constant 0 : index
    %c0_5 = arith.constant 0 : index
    %11 = vector.load %arg6[%c0_4, %c0_5] : memref<8x1xf32, #tpu.memory_space<vmem>>, vector<8x1xf32>
    %12 = arith.mulf %10, %11 : vector<8x1xf32>
    %13 = vector.broadcast %8 : vector<8x1xf32> to vector<8x32xf32>
    %14 = arith.subf %3, %13 : vector<8x32xf32>
    %15 = math.exp %14 : vector<8x32xf32>
    %cst_6 = arith.constant dense<0.000000e+00> : vector<8xf32>
    %16 = vector.multi_reduction <add>, %15, %cst_6 [1] : vector<8x32xf32> to vector<8xf32>
    %17 = vector.shape_cast %16 : vector<8xf32> to vector<8x1xf32>
    %18 = arith.addf %12, %17 : vector<8x1xf32>
    %c0_7 = arith.constant 0 : index
    %c0_8 = arith.constant 0 : index
    %19 = vector.load %arg6[%c0_7, %c0_8] : memref<8x1xf32, #tpu.memory_space<vmem>>, vector<8x1xf32>
    tpu.vector_store %arg6[%c0_7, %c0_8], %18 {strides = array<i32>} : memref<8x1xf32, #tpu.memory_space<vmem>>, vector<8x1xf32>,
    %c0_9 = arith.constant 0 : index
    %c0_10 = arith.constant 0 : index
    %20 = vector.load %arg5[%c0_9, %c0_10] : memref<8x1xf32, #tpu.memory_space<vmem>>, vector<8x1xf32>
    tpu.vector_store %arg5[%c0_9, %c0_10], %8 {strides = array<i32>} : memref<8x1xf32, #tpu.memory_space<vmem>>, vector<8x1xf32>,
    %c0_11 = arith.constant 0 : index
    %c0_12 = arith.constant 0 : index
    %21 = vector.load %arg3[%c0_11, %c0_12] : memref<8x1xi32, #tpu.memory_space<vmem>>, vector<8x1xi32>
    %c32_i32 = arith.constant 32 : i32
    %22 = arith.muli %arg1, %c32_i32 : i32
    %23 = vector.broadcast %22 : i32 to vector<8x1xi32>
    %24 = arith.subi %21, %23 : vector<8x1xi32>
    %c0_13 = arith.constant 0 : index
    %c0_14 = arith.constant 0 : index
    %25 = vector.load %arg7[%c0_13, %c0_14] : memref<8x1xf32, #tpu.memory_space<vmem>>, vector<8x1xf32>
    %26 = vector.broadcast %24 : vector<8x1xi32> to vector<8x32xi32>
    %27 = arith.cmpi eq, %4, %26 : vector<8x32xi32>
    %cst_15 = arith.constant 0.000000e+00 : f32
    %28 = vector.broadcast %cst_15 : f32 to vector<8x32xf32>
    %29 = arith.select %27, %3, %28 : vector<8x32xi1>, vector<8x32xf32>
    %cst_16 = arith.constant dense<0.000000e+00> : vector<8xf32>
    %30 = vector.multi_reduction <add>, %29, %cst_16 [1] : vector<8x32xf32> to vector<8xf32>
    %31 = vector.shape_cast %30 : vector<8xf32> to vector<8x1xf32>
    %32 = arith.addf %25, %31 : vector<8x1xf32>
    %c0_17 = arith.constant 0 : index
    %c0_18 = arith.constant 0 : index
    %33 = vector.load %arg7[%c0_17, %c0_18] : memref<8x1xf32, #tpu.memory_space<vmem>>, vector<8x1xf32>
    tpu.vector_store %arg7[%c0_17, %c0_18], %32 {strides = array<i32>} : memref<8x1xf32, #tpu.memory_space<vmem>>, vector<8x1xf32>,
    %c0_i32_19 = arith.constant 0 : i32
    %34 = arith.cmpi eq, %arg1, %c0_i32_19 : i32
    %35 = arith.extui %34 : i1 to i32
    %c0_i32_20 = arith.constant 0 : i32
    %36 = arith.cmpi ne, %35, %c0_i32_20 : i32
    scf.if %36 {
      %c0_21 = arith.constant 0 : index
      %c0_22 = arith.constant 0 : index
      %37 = vector.load %arg5[%c0_21, %c0_22] : memref<8x1xf32, #tpu.memory_space<vmem>>, vector<8x1xf32>
      %c0_23 = arith.constant 0 : index
      %c0_24 = arith.constant 0 : index
      %38 = vector.load %arg6[%c0_23, %c0_24] : memref<8x1xf32, #tpu.memory_space<vmem>>, vector<8x1xf32>
      %39 = math.log %38 : vector<8x1xf32>
      %40 = arith.addf %37, %39 : vector<8x1xf32>
      %c0_25 = arith.constant 0 : index
      %c0_26 = arith.constant 0 : index
      %41 = vector.load %arg7[%c0_25, %c0_26] : memref<8x1xf32, #tpu.memory_space<vmem>>, vector<8x1xf32>
      %42 = arith.subf %40, %41 : vector<8x1xf32>
      %c0_27 = arith.constant 0 : index
      %c0_28 = arith.constant 0 : index
      %43 = vector.load %arg4[%c0_27, %c0_28] : memref<8x1xf32, #tpu.memory_space<vmem>>, vector<8x1xf32>
      tpu.vector_store %arg4[%c0_27, %c0_28], %42 {strides = array<i32>} : memref<8x1xf32, #tpu.memory_space<vmem>>, vector<8x1xf32>,
    } else {
    }
    return
  }
  func.func @transform_0(%arg0: i32, %arg1: i32) -> (i32, i32) {
    %c0_i32 = arith.constant 0 : i32
    return %arg0, %arg1 : i32, i32
  }
  func.func @transform_1(%arg0: i32, %arg1: i32) -> (i32, i32) {
    %c0_i32 = arith.constant 0 : i32
    %c0_i32_0 = arith.constant 0 : i32
    return %arg0, %c0_i32 : i32, i32
  }
  func.func @transform_2(%arg0: i32, %arg1: i32) -> (i32, i32) {
    %c0_i32 = arith.constant 0 : i32
    %c0_i32_0 = arith.constant 0 : i32
    return %arg0, %c0_i32 : i32, i32
  }
}

</mosaic_0001>

<bundles_post_ra>
// kernel: cross_entropy_loss.1
= control target key start
LH: loop header
LB: loop body
LE: loop exit
PB: predicated region body
PF: predicated region fallthrough
CT: control target
= control target key end

     0   :  { %vm23_vm0 = vcmask 261120   ;;  %vm15_vm1 = vcmask 7168   ;;  %v89_v1 = vmov -inf   ;;  %v90_v3 = vmov 0   ;;  %s126_s0 = inlined_call_operand.vmem [shape: f32[8,32], index: 0, kind: input, shape index: {}]   ;;  %s127_s1 = inlined_call_operand.vmem [shape: s32[8,1], index: 1, kind: input, shape index: {}]   ;;  %s128_s2 = inlined_call_operand.vmem [shape: f32[8,1], index: 2, kind: output, shape index: {}]  }
   0x1   :  { %v19_v0 = vld [vmem:[%s126_s0] sm:$0xff]  ;;  %16 = vst.msk [vmem:[#allocation2] sm:$0xff] %vm15_vm1, %v89_v1  ;;  %81 = vset.pattern.permute.xlu0 %v90_v3  ;;  %82 = vset.pattern.permute.xlu1 %v90_v3  ;;  %v91_v4 = vmov 0.0   ;;  %v20_v13 = vlaneseq }
   0x2   :  { %v24_v2 = vsel %vm23_vm0, %v19_v0, -inf  ;;  %17 = vst.msk [vmem:[#allocation3] sm:$0xff] %vm15_vm1, %v91_v4  ;;  %18 = vst.msk [vmem:[#allocation4] sm:$0xff] %vm15_vm1, %v91_v4  ;;  %v48_v5 = vld [vmem:[%s127_s1] sm:$0xff] }
   0x3   :  { %25 = vmax.xlane.f32.xlu0 %v24_v2  ;;  %54 = vperm.xlu1 %82, %v48_v5   ;;  %v21_v14 = vand.u32 127, %v20_v13 }
   0x8   :  { %v22_v6 = vld [vmem:[#allocation2] sm:$0xff] }
   0x9   :  { %v31_v22 = vld [vmem:[#allocation3] sm:$0xff]  ;;  %v52_v26 = vld [vmem:[#allocation4] sm:$0xff] }
  0x82   :  { %v55_v15 = vpop.permute.xlu1 %54 }
  0x83   :  { %vm56_vm2 = vcmp.eq.s32.totalorder %v21_v14, %v55_v15 }
  0x84   :  { %v57_v17 = vsel %vm56_vm2, %v19_v0, 0.0 }
  0x85   :  { %v58_v19 = vsel %vm23_vm0, %v57_v17, 0.0 }
  0x90   :  { %v26_v7 = vpop.xlane.xlu0 %25 }
  0x91   :  { %v27_v8 = vmax.f32 %v22_v6, %v26_v7 }
  0x93   :  { %v28_v9 = vsub.f32 %v22_v6, %v27_v8  ;;  %47 = vst.msk [vmem:[#allocation2] sm:$0xff] %vm15_vm1, %v27_v8  ;;  %35 = vperm.xlu0 %81, %v27_v8  }
  0x95   :  { %v29_v20 = vmul.f32 1.442695, %v28_v9 }
  0x9a   :  { %v66_v32 = vld [vmem:[#allocation2] sm:$0xff] }
 0x112   :  { %v36_v10 = vpop.permute.xlu0 %35 }
 0x113   :  { %v38_v11 = vsub.f32 %v19_v0, %v36_v10 }
 0x115   :  { %v39_v12 = vmul.f32 1.442695, %v38_v11 }
 0x117   :  { %83 = vpow2.f32 %v39_v12 }
 0x118   :  { %85 = vpow2.f32 %v29_v20 }
 0x121   :  { %v84_v16 = vpop.eup %83 }
 0x122   :  { %v41_v18 = vsel %vm23_vm0, %v84_v16, 0.0  ;;  %v86_v21 = vpop.eup %85 }
 0x123   :  { %42 = vadd.xlane.f32.xlu1 %v41_v18  ;;  %v32_v23 = vmul.f32 %v86_v21, %v31_v22 }
 0x127   :  { %59 = vadd.xlane.f32.xlu1 %v58_v19 }
 0x1b0   :  { %v43_v24 = vpop.xlane.xlu1 %42 }
 0x1b1   :  { %v44_v25 = vadd.f32 %v43_v24, %v32_v23 }
 0x1b3   :  { %46 = vst.msk [vmem:[#allocation3] sm:$0xff] %vm15_vm1, %v44_v25 }
 0x1b4   :  { %v60_v27 = vpop.xlane.xlu1 %59 }
 0x1b5   :  { %v61_v28 = vadd.f32 %v60_v27, %v52_v26 }
 0x1b7   :  { %62 = vst.msk [vmem:[#allocation4] sm:$0xff] %vm15_vm1, %v61_v28 }
 0x1ba   :  { %v67_v29 = vld [vmem:[#allocation3] sm:$0xff] }
 0x1bb   :  { %87 = vlog2.f32 %v67_v29 }
 0x1be   :  { %v71_v33 = vld [vmem:[#allocation4] sm:$0xff] }
 0x1c5   :  { %v88_v30 = vpop.eup %87 }
 0x1c6   :  { %v69_v31 = vmul.f32 0.6931472, %v88_v30 }
 0x1c8   :  { %v70_v34 = vadd.f32 %v69_v31, %v66_v32 }
 0x1ca   :  { %v72_v35 = vsub.f32 %v70_v34, %v71_v33 }
 0x1cc   :  { %73 = vst.msk [vmem:[%s128_s2] sm:$0xff] %vm15_vm1, %v72_v35 }

</bundles_post_ra>
